<compile_context>
chip_gen: v5e
topology: v5e:2x2
jax: 0.10.0
libtpu: 0.0.40
codegen_flags: <defaults>
</compile_context>

<pallas_src>
import functools

import jax
import jax.numpy as jnp
from jax import lax
from jax.experimental import pallas as pl
from jax.experimental.pallas import tpu as pltpu


def _round_up(v, m):
    return ((v + m - 1) // m) * m


def _linear_sigmoid_kernel(x_ref, w_ref, b_ref, o_ref):
    # x_ref: (TB, F) VMEM; w_ref: (1, F) VMEM; b_ref: (1, 1) SMEM;
    # o_ref: (1, 1, TB) VMEM (lane-dense row of per-sample outputs).
    x = x_ref[...]                       # (TB, F)
    w = w_ref[...]                       # (1, F), lane-dense
    # (1, F) contracted against (TB, F) on the last dims -> (1, TB).
    # NT matmul rides the otherwise idle MXU and yields a lane-dense row.
    logits = lax.dot_general(
        w, x, (((1,), (1,)), ((), ())),
        preferred_element_type=jnp.float32,
        precision=lax.Precision.HIGHEST)
    logits = logits + b_ref[0, 0]        # scalar bias from SMEM
    o_ref[...] = jax.nn.sigmoid(logits)[None].astype(o_ref.dtype)


@functools.partial(jax.jit, static_argnames=("target_tile_bytes",))
def linear_sigmoid(x, weight, bias, *, target_tile_bytes=4 * 1024 * 1024):
    """x: (B, F) f32; weight: (1, F) f32 (torch nn.Linear layout); bias: (1,) f32."""
    B, F = x.shape
    w = weight.reshape(1, F).astype(jnp.float32)   # lane-dense weight
    b = bias.reshape(1, 1).astype(jnp.float32)     # scalar bias -> SMEM

    # ---- Tile sizing: bytes-based, lane-padding aware, generation aware ----
    f_pad = _round_up(F, 128)
    bytes_per_row = f_pad * 4                      # f32 row as it sits in VMEM

    try:
        vmem_cap = int(pltpu.get_tpu_info().vmem_capacity_bytes)
    except Exception:
        vmem_cap = 64 * 1024 * 1024                # v7x per-TC floor
    vmem_budget = min((vmem_cap * 3) // 4, 48 * 1024 * 1024)

    tile_bytes = min(target_tile_bytes, vmem_budget // 4)   # x is double-buffered
    tb = max(8, tile_bytes // bytes_per_row)
    tb = (tb // 128) * 128 if tb >= 128 else (tb // 8) * 8
    # Never bigger than the (rounded-up) batch.
    tb = min(tb, _round_up(B, 128) if B >= 128 else _round_up(B, 8))
    # v7x megacore: guarantee >= 2 grid steps for mid/large batches so the
    # "parallel" batch axis actually spans both TensorCores.
    if B >= 512 and pl.cdiv(B, tb) < 2:
        tb = _round_up(pl.cdiv(B, 2), 128)
    tb = max(8, tb)

    num_tiles = pl.cdiv(B, tb)

    x_tile_bytes = tb * bytes_per_row
    out_tile_bytes = 8 * tb * 4                    # (1,1,TB) padded to 8 sublanes
    w_tile_bytes = 8 * f_pad * 4
    vmem_needed = 2 * x_tile_bytes + 2 * out_tile_bytes + w_tile_bytes
    vmem_limit = int(min(vmem_budget, max(vmem_needed + (4 << 20), 16 << 20)))

    out = pl.pallas_call(
        _linear_sigmoid_kernel,
        out_shape=jax.ShapeDtypeStruct((num_tiles, 1, tb), jnp.float32),
        grid_spec=pltpu.PrefetchScalarGridSpec(
            num_scalar_prefetch=0,
            grid=(num_tiles,),
            in_specs=[
                pl.BlockSpec((tb, F), lambda i: (i, 0)),             # x tile (partial tail OK)
                pl.BlockSpec((1, F), lambda i: (0, 0)),              # weight, resident
                pl.BlockSpec(memory_space=pltpu.MemorySpace.SMEM),   # bias scalar
            ],
            out_specs=pl.BlockSpec((1, 1, tb), lambda i: (i, 0, 0)), # lane-dense row
        ),
        compiler_params=pltpu.CompilerParams(
            dimension_semantics=("parallel",),
            vmem_limit_bytes=vmem_limit,
        ),
        cost_estimate=pl.CostEstimate(
            flops=2 * B * F,
            transcendentals=2 * B,                 # sigmoid ~ exp + reciprocal
            bytes_accessed=B * F * 4 + F * 4 + num_tiles * tb * 4,
        ),
    )(x, w, b)

    # (num_tiles, 1, TB) -> flat -> first B rows -> (B, 1).
    return out.reshape(num_tiles * tb)[:B].reshape(B, 1)


if __name__ == "__main__":
    key = jax.random.PRNGKey(0)
    kx, kw, kb = jax.random.split(key, 3)

    batch = 8
    n_input_features = 32

    # Deterministic synthetic parameters mimicking nn.Linear(n_input_features, 1).
    x = jax.random.normal(kx, (batch, n_input_features), dtype=jnp.float32)
    weight = jax.random.normal(kw, (1, n_input_features), dtype=jnp.float32) * 0.1
    bias = jax.random.normal(kb, (1,), dtype=jnp.float32) * 0.1

    y = jax.block_until_ready(linear_sigmoid(x, weight, bias))

    # Exact-f32 elementwise reference (kernel matmul uses HIGHEST precision;
    # atol leaves margin in case precision is lowered by the backend).
    y_ref = jax.nn.sigmoid(jnp.sum(x * weight, axis=-1, keepdims=True) + bias)
    assert y.shape == (batch, 1)
    assert jnp.allclose(y, y_ref, atol=1e-3), "mismatch vs reference"

    # Non-multiple-of-tile batch to exercise the partial tail block path.
    x2 = jax.random.normal(kx, (13, n_input_features), dtype=jnp.float32)
    y2 = jax.block_until_ready(linear_sigmoid(x2, weight, bias))
    y2_ref = jax.nn.sigmoid(jnp.sum(x2 * weight, axis=-1, keepdims=True) + bias)
    assert y2.shape == (13, 1)
    assert jnp.allclose(y2, y2_ref, atol=1e-3), "mismatch vs reference (tail block)"

    print("KERNEL_OK")
</pallas_src>

<mosaic_0001>
module attributes {stable_mosaic.version = 11 : i64} {
  func.func @_linear_sigmoid_kernel(%arg0: i32, %arg1: memref<8x32xf32, #tpu.memory_space<vmem>>, %arg2: memref<1x32xf32, #tpu.memory_space<vmem>>, %arg3: memref<1x1xf32, #tpu.memory_space<smem>>, %arg4: memref<1x1x8xf32, #tpu.memory_space<vmem>>) attributes {dimension_semantics = [#tpu.dimension_semantics<parallel>], iteration_bounds = array<i64: 1>, scalar_prefetch = 0 : i64, scratch_operands = 0 : i64, tpu.core_type = #tpu.core_type<tc>, window_params = [{transform_indices = @transform_0, window_bounds = array<i64: 8, 32>}, {pipeline_mode = #tpu.pipeline_mode<synchronous>, transform_indices = @transform_1, window_bounds = array<i64: 1, 32>}, {transform_indices = @transform_2, window_bounds = array<i64: 1, 1>}, {transform_indices = @transform_3, window_bounds = array<i64: 1, 1, 8>}]} {
    %c0 = arith.constant 0 : index
    %c0_0 = arith.constant 0 : index
    %0 = vector.load %arg1[%c0, %c0_0] : memref<8x32xf32, #tpu.memory_space<vmem>>, vector<8x32xf32>
    %c0_1 = arith.constant 0 : index
    %c0_2 = arith.constant 0 : index
    %1 = vector.load %arg2[%c0_1, %c0_2] : memref<1x32xf32, #tpu.memory_space<vmem>>, vector<1x32xf32>
    %cst = arith.constant dense<0.000000e+00> : vector<1x8xf32>
    %2 = tpu.matmul %1, %0, %cst {dimension_numbers = #tpu.dot_dimension_numbers<[1], [1], [0], [0], [0, 0, 1, 0], [], []>, precision = #tpu.contract_precision<fp32>} : vector<1x32xf32>, vector<8x32xf32>, vector<1x8xf32> -> vector<1x8xf32>
    %c0_3 = arith.constant 0 : index
    %c0_4 = arith.constant 0 : index
    %3 = memref.load %arg3[%c0_3, %c0_4] : memref<1x1xf32, #tpu.memory_space<smem>>
    %4 = vector.broadcast %3 : f32 to vector<1x8xf32>
    %5 = arith.addf %2, %4 : vector<1x8xf32>
    %6 = arith.negf %5 : vector<1x8xf32>
    %7 = math.exp %6 : vector<1x8xf32>
    %cst_5 = arith.constant 1.000000e+00 : f32
    %8 = vector.broadcast %cst_5 : f32 to vector<1x8xf32>
    %9 = arith.addf %8, %7 : vector<1x8xf32>
    %10 = arith.divf %8, %9 : vector<1x8xf32>
    %11 = vector.shape_cast %10 : vector<1x8xf32> to vector<1x1x8xf32>
    %c0_6 = arith.constant 0 : index
    %c0_7 = arith.constant 0 : index
    %c0_8 = arith.constant 0 : index
    %12 = vector.load %arg4[%c0_6, %c0_7, %c0_8] : memref<1x1x8xf32, #tpu.memory_space<vmem>>, vector<1x1x8xf32>
    tpu.vector_store %arg4[%c0_6, %c0_7, %c0_8], %11 {strides = array<i32>} : memref<1x1x8xf32, #tpu.memory_space<vmem>>, vector<1x1x8xf32>,
    return
  }
  func.func @transform_0(%arg0: i32) -> (i32, i32) {
    %c0_i32 = arith.constant 0 : i32
    %c0_i32_0 = arith.constant 0 : i32
    return %arg0, %c0_i32 : i32, i32
  }
  func.func @transform_1(%arg0: i32) -> (i32, i32) {
    %c0_i32 = arith.constant 0 : i32
    %c0_i32_0 = arith.constant 0 : i32
    %c0_i32_1 = arith.constant 0 : i32
    return %c0_i32, %c0_i32_0 : i32, i32
  }
  func.func @transform_2(%arg0: i32) -> (i32, i32) {
    %c0_i32 = arith.constant 0 : i32
    %c0_i32_0 = arith.constant 0 : i32
    %c0_i32_1 = arith.constant 0 : i32
    return %c0_i32, %c0_i32_0 : i32, i32
  }
  func.func @transform_3(%arg0: i32) -> (i32, i32, i32) {
    %c0_i32 = arith.constant 0 : i32
    %c0_i32_0 = arith.constant 0 : i32
    %c0_i32_1 = arith.constant 0 : i32
    return %arg0, %c0_i32, %c0_i32_0 : i32, i32, i32
  }
}

</mosaic_0001>

<bundles_post_ra>
// kernel: linear_sigmoid.1
= control target key start
LH: loop header
LB: loop body
LE: loop exit
PB: predicated region body
PF: predicated region fallthrough
CT: control target
= control target key end

     0   :  { %9 = vsyncpa [#allocation4], 0  ;;  %s318_s0 = inlined_call_operand.hbm [shape: f32[8,32], index: 0, kind: input, shape index: {}]   ;;  %s319_s1 = inlined_call_operand.vmem [shape: f32[1,32], index: 1, kind: input, shape index: {}]   ;;  %s320_s2 = inlined_call_operand.<no memory space> [shape: f32[1,1], index: 2, kind: input, shape index: {}]   ;;  %s321_s3 = inlined_call_operand.hbm [shape: f32[1,1,8], index: 3, kind: output, shape index: {}]  }
   0x1   :  { %10 = vsyncpa [#allocation5], 0  ;;  %s16_s14 = sshll.u32 %s318_s0, 4  ;;  %s284_s15 = smov [#allocation3]   ;;  %s17_s14 = int_to_ptr.hbm [resolvable:$true] %s16_s14 }
   0x2   :  { %s18_s16 = sshll.u32 %s284_s15, 4  ;;  %s19_s16 = int_to_ptr.vmem [resolvable:$true] %s18_s16 }
   0x3   :  { %21 = dma.hbm_to_vmem [thread:$0]  %s17_s14, 128, %s19_s16, [#allocation4]  }
   0x4   :  { %280 = dma.done.wait [#allocation4], 128  }
   0x5   :  { %281 = vsyncadd [#allocation4], 4294967168  ;;  %vm34_vm0 = vcmask 261120   ;;  %v30_v0 = vld [vmem:[#allocation3] sm:$0xff]  ;;  %v33_v14 = vstv %s320_s2  ;;  %s285_s2 = smov [#allocation6]   ;;  %s215_s22 = sshll.u32 %s321_s3, 4  ;;  %s216_s22 = int_to_ptr.hbm [resolvable:$true] %s215_s22 }
   0x6   :  { %v31_v1 = vld [vmem:[%s319_s1] sm:$0x1]  ;;  %v39_v2 = vsel %vm34_vm0, %v30_v0, 0  ;;  %s213_s19 = sshll.u32 %s285_s2, 4  ;;  %vm206_vm4 = vcmask 57344   ;;  %s214_s19 = int_to_ptr.vmem [resolvable:$true] %s213_s19 }
   0x7   :  { %v36_v3 = vsel %vm34_vm0, %v31_v1, 0  ;;  %v56_v4 = vand.u32 4294901760, %v39_v2 }
   0x8   :  { %v58_v5 = vand.u32 4294901760, %v36_v3 }
   0x9   :  { %v83_v6 = vsub.f32 %v39_v2, %v56_v4  ;;  %57 = vmatpush.xpose.msra.mxu0 %v56_v4  ;;  %133 = vmatpush.xpose.msra.mxu3 %v56_v4 }
   0xa   :  { %v59_v7 = vsub.f32 %v36_v3, %v58_v5 }
   0xb   :  { %110 = vmatpush.xpose.msra.mxu2 %v83_v6  ;;  %v84_v8 = vand.u32 4294901760, %v83_v6 }
   0xc   :  { %v60_v9 = vand.u32 4294901760, %v59_v7 }
   0xd   :  { %v85_v10 = vsub.f32 %v83_v6, %v84_v8  ;;  %159 = vmatpush.xpose.msrb.mxu0 %v84_v8 }
   0xe   :  { %v61_v11 = vsub.f32 %v59_v7, %v60_v9  ;;  %137 = vmatmul.f32.vlgmr.msra.gmra.mxu3 %v60_v9  ;;  %113 = vmatmul.f32.vlgmr.msra.gmra.mxu2 %v59_v7 }
   0xf   :  { %v86_v12 = vand.u32 4294901760, %v85_v10 }
  0x10   :  { %v62_v13 = vand.u32 4294901760, %v61_v11 }
  0x11   :  { %87 = vmatpush.xpose.msra.mxu1 %v86_v12 }
  0x12   :  { %63 = vmatmul.f32.vlgmr.msra.gmra.mxu0 %v62_v13 }
  0x14   :  { %89 = vmatmul.f32.vlgmr.msra.gmra.mxu1 %v58_v5 }
  0x15   :  { %181 = vmatpush.xpose.msrb.mxu1 %v56_v4 }
  0x1a   :  { %161 = vmatmul.f32.vlgmr.msrb.gmra.mxu0 %v58_v5 }
  0x1c   :  { %183 = vmatmul.f32.vlgmr.msrb.gmra.mxu1 %v58_v5 }
  0x8f   :  { %v64_v15 = vpop.f32.mrf.mxu0 }
  0x90   :  { %v65_v16 = vadd.f32 %v64_v15, %v33_v14 }
  0x91   :  { %v90_v17 = vpop.f32.mrf.mxu1  ;;  %v114_v18 = vpop.f32.mrf.mxu2 }
  0x92   :  { %v91_v19 = vadd.f32 %v90_v17, %v65_v16  ;;  %v138_v20 = vpop.f32.mrf.mxu3 }
  0x94   :  { %v115_v21 = vadd.f32 %v114_v18, %v91_v19 }
  0x96   :  { %v139_v22 = vadd.f32 %v138_v20, %v115_v21 }
  0x97   :  { %v162_v23 = vpop.f32.mrf.mxu0 }
  0x98   :  { %v163_v24 = vadd.f32 %v162_v23, %v139_v22 }
  0x99   :  { %v184_v25 = vpop.f32.mrf.mxu1 }
  0x9a   :  { %v185_v26 = vadd.f32 %v184_v25, %v163_v24 }
  0x9c   :  { %v225_v27 = vmul.f32 -1.442695, %v185_v26 }
  0x9e   :  { %228 = vpow2.f32 %v225_v27 }
  0xa4   :  { %v229_v28 = vpop.eup %228 }
  0xa5   :  { %v190_v29 = vadd.f32 1.0, %v229_v28 }
  0xa7   :  { %230 = vrcp.f32 %v190_v29  ;;  %v202_v33 = vand.u32 2147483648, %v190_v29  ;;  %v200_v35 = vand.u32 2147483647, %v190_v29  ;;  %vm196_vm2 = vweird.f32 %v190_v29 }
  0xa9   :  { %v203_v37 = vor.u32 1.1754944e-38, %v202_v33  ;;  %vm201_vm5 = vcmp.eq.f32.partialorder %v200_v35, 8.507059e+37 }
  0xad   :  { %v231_v30 = vpop.eup %230 }
  0xae   :  { %v192_v31 = vmul.f32 %v231_v30, %v190_v29  ;;  %vm197_vm1 = vweird.f32 %v231_v30 }
  0xaf   :  { %vm198_vm3 = vmor %vm196_vm2, %vm197_vm1 }
  0xb0   :  { %v193_v32 = vsub.f32 1.0, %v192_v31 }
  0xb2   :  { %v194_v34 = vmul.f32 %v231_v30, %v193_v32 }
  0xb4   :  { %v195_v36 = vadd.f32 %v231_v30, %v194_v34 }
  0xb6   :  { %v199_v38 = vsel %vm198_vm3, %v231_v30, %v195_v36 }
  0xb7   :  { %v204_v39 = vsel %vm201_vm5, %v203_v37, %v199_v38 }
  0xb8   :  { %207 = vst.msk [vmem:[#allocation6] sm:$0x1] %vm206_vm4, %v204_v39 }
  0xb9   :  { %218 = dma.vmem_to_hbm [thread:$0]  %s214_s19, 16, %s216_s22, [#allocation5]  }
  0xba   :  { %282 = dma.done.wait [#allocation5], 16  }
  0xbb   :  { %283 = vsyncadd [#allocation5], 4294967280 }
  0xbc   :  { %223 = vsyncpa [#allocation4], 1 }
  0xbd   :  { %224 = vsyncpa [#allocation5], 1 }

</bundles_post_ra>
